<compile_context>
chip_gen: v5e
topology: v5e:2x2
jax: 0.10.0
libtpu: 0.0.40
codegen_flags: <defaults>
</compile_context>

<pallas_src>
import functools
import math

import jax
import jax.numpy as jnp
import numpy as np
from jax.experimental import pallas as pl
from jax.experimental.pallas import tpu as pltpu

_PI = float(np.float32(math.pi))                              # float32(pi), as torch uses on f32 tensors
_SIN_PI = float(np.sin(np.float64(np.float32(math.pi))))      # sin(float32(pi)) ~= -8.742278e-08


def _ipd_kernel(pairs_smem, yp_ref, yq_ref, *out_refs,
                do_ipd, do_cos, do_sin, do_ild):
    """One grid step = (mic pair p, time tile t).

    pairs_smem    : (P, 2) int32 scalar-prefetch table (used only by index_maps)
    yp_ref/yq_ref : (1, B, 2, Tt, F) float32 channel planes of the two mics
    out_refs      : [phase (1, B, 2, Tt, NF*F)] (+) [ild (1, B, Tt, F)]
    """
    del pairs_smem  # only consumed by the BlockSpec index_maps
    yp = yp_ref[...]          # (1, B, 2, Tt, F)
    yq = yq_ref[...]

    oi = 0
    if do_ipd or do_cos or do_sin:
        # torch.angle on a *real* tensor is pi for negative elements and 0
        # otherwise, so theta = angle(yp) - angle(yq) ∈ {-pi, 0, +pi}.  Every
        # transcendental collapses to a select on the sign-difference mask.
        # (torch.angle(-0.0) == pi is a tiny edge-case divergence: -0.0 < 0 is
        # False here.)
        p_neg = yp < 0.0
        q_neg = yq < 0.0
        sign_diff = jnp.logical_xor(p_neg, q_neg)

        feats = []
        if do_ipd:   # mod(theta + pi, 2pi) - pi  ->  -pi where signs differ, else 0
            feats.append(jnp.where(sign_diff, jnp.float32(-_PI), jnp.float32(0.0)))
        if do_cos:   # cos(theta) -> -1 / +1
            feats.append(jnp.where(sign_diff, jnp.float32(-1.0), jnp.float32(1.0)))
        if do_sin:   # sin(+-float32(pi)) = -+8.742278e-08 (matches torch's f32 sin(pi))
            feats.append(jnp.where(
                sign_diff,
                jnp.where(p_neg, jnp.float32(_SIN_PI), jnp.float32(-_SIN_PI)),
                jnp.float32(0.0)))

        phase = feats[0] if len(feats) == 1 else jnp.concatenate(feats, axis=-1)
        out_refs[oi][...] = phase
        oi += 1

    if do_ild:
        # ILD: magnitude over the (real, imag) axis, then log ratio (same eps
        # placement as the PyTorch reference).
        yp_sp = jnp.sqrt(yp[:, :, 0] ** 2 + yp[:, :, 1] ** 2)   # (1, B, Tt, F)
        yq_sp = jnp.sqrt(yq[:, :, 0] ** 2 + yq[:, :, 1] ** 2)
        out_refs[oi][...] = jnp.log(yp_sp / (yq_sp + 1e-13))


def _choose_t_tile(B, T, F, n_phase, do_ild, budget_bytes=8 * 1024 * 1024):
    """Largest time tile (multiple of 8, or full T) whose per-step block
    footprint (2 inputs + outputs, f32, lane-padded) fits `budget_bytes`;
    double-buffered this stays well under the scoped VMEM limit everywhere."""
    lane = 128
    f_pad = -(-F // lane) * lane
    pf_pad = -(-(max(n_phase, 1) * F) // lane) * lane
    per_t = 4 * B * (2 * 2 * f_pad                      # yp + yq       (B, 2, ., F)
                     + (2 * pf_pad if n_phase else 0)   # phase output  (B, 2, ., NF*F)
                     + (f_pad if do_ild else 0))        # ild output    (B, ., F)
    t_tile = (budget_bytes // max(per_t, 1)) // 8 * 8
    if T <= 8 or t_tile >= T:
        return T
    return max(8, t_tile)


def _ipd_features(xt, pairs, *, do_ipd, do_cos, do_sin, do_ild):
    """xt: (C, B, 2, T, F) float32, pairs: (P, 2) int32 -> tuple of outputs."""
    C, B, two, T, F = xt.shape
    P = int(pairs.shape[0])
    n_phase = int(do_ipd) + int(do_cos) + int(do_sin)

    t_tile = _choose_t_tile(B, T, F, n_phase, do_ild)
    nt = pl.cdiv(T, t_tile)

    # Both inputs are the same channel-leading array; the scalar-prefetched
    # pair table picks the channel plane for each grid step.
    in_specs = [
        pl.BlockSpec((1, B, two, t_tile, F),
                     lambda p, t, pr: (pr[p, 0], 0, 0, t, 0)),
        pl.BlockSpec((1, B, two, t_tile, F),
                     lambda p, t, pr: (pr[p, 1], 0, 0, t, 0)),
    ]

    out_shapes, out_specs = [], []
    if n_phase:
        out_shapes.append(jax.ShapeDtypeStruct((P, B, two, T, n_phase * F), jnp.float32))
        out_specs.append(pl.BlockSpec((1, B, two, t_tile, n_phase * F),
                                      lambda p, t, pr: (p, 0, 0, t, 0)))
    if do_ild:
        out_shapes.append(jax.ShapeDtypeStruct((P, B, T, F), jnp.float32))
        out_specs.append(pl.BlockSpec((1, B, t_tile, F),
                                      lambda p, t, pr: (p, 0, t, 0)))

    kernel = functools.partial(_ipd_kernel, do_ipd=do_ipd, do_cos=do_cos,
                               do_sin=do_sin, do_ild=do_ild)
    return pl.pallas_call(
        kernel,
        out_shape=tuple(out_shapes),
        grid_spec=pltpu.PrefetchScalarGridSpec(
            num_scalar_prefetch=1,
            grid=(P, nt),
            in_specs=in_specs,
            out_specs=tuple(out_specs),
        ),
        compiler_params=pltpu.CompilerParams(
            dimension_semantics=("parallel", "parallel"),
            vmem_limit_bytes=32 * 1024 * 1024,
        ),
    )(pairs, xt, xt)


class IPD:
    """JAX/Pallas port of the PyTorch IPD module (no learnable parameters)."""

    def __init__(self, num_bin, do_IPD=True, do_cosIPD=True, do_sinIPD=True,
                 do_ILD=True):
        self.num_bin = num_bin
        self.do_IPD = do_IPD
        self.do_cosIPD = do_cosIPD
        self.do_sinIPD = do_sinIPD
        self.do_ILD = do_ILD
        self.num_feat = int(do_IPD + do_cosIPD + do_sinIPD + do_ILD)

    def get_size(self, pair_id):
        return self.num_feat * len(pair_id) * self.num_bin

    def __call__(self, x, pair_id):
        if self.num_feat == 0 or len(pair_id) == 0:
            return None
        x = jnp.asarray(x, jnp.float32)
        B, two, T, F, C = x.shape
        # Channel-leading layout so the kernel DMAs whole channel planes chosen
        # by the prefetched pair table (no per-pair jnp.stack gather in HBM).
        xt = jnp.transpose(x, (4, 0, 1, 2, 3))                  # (C, B, 2, T, F)
        pairs = jnp.asarray(np.asarray(pair_id, dtype=np.int32).reshape(len(pair_id), 2))
        P = len(pair_id)
        n_phase = int(self.do_IPD) + int(self.do_cosIPD) + int(self.do_sinIPD)

        results = _ipd_features(xt, pairs,
                                do_ipd=self.do_IPD, do_cos=self.do_cosIPD,
                                do_sin=self.do_sinIPD, do_ild=self.do_ILD)

        ri = 0
        out = None
        if n_phase:
            phase = results[ri]; ri += 1                        # (P, B, 2, T, n_phase*F)
            # torch.cat over pairs along dim 0 == pair-major flatten; the
            # feature concat along -1 is already fused into the kernel output.
            out = phase.reshape((P * B,) + phase.shape[2:])
        if self.do_ILD:
            ild = results[ri]; ri += 1                          # (P, B, T, F)
            ild = ild.reshape((P * B,) + ild.shape[2:])
            if out is None:
                out = ild
            else:
                # TODO(synk): the PyTorch reference cats a 4-D phase tensor with a
                # 3-D ILD tensor along dim -1, which raises a rank-mismatch error;
                # we preserve that (erroring) behaviour rather than faking it.
                out = jnp.concatenate((out, ild), -1)
        return out


def _reference(x, pair_id, do_IPD, do_cosIPD, do_sinIPD, do_ILD):
    """Pure-jnp port of the PyTorch forward, for the numeric self-check."""
    def angle(v):  # torch.angle of a real tensor
        return jnp.where(v < 0.0, jnp.float32(math.pi), jnp.float32(0.0))
    ipd_l, cos_l, sin_l, ild_l = [], [], [], []
    for p, q in pair_id:
        Yp = x[..., p]
        Yq = x[..., q]
        th = angle(Yp) - angle(Yq)
        if do_IPD:
            ipd_l.append(jnp.mod(th + math.pi, 2 * math.pi) - math.pi)
        if do_cosIPD:
            cos_l.append(jnp.cos(th))
        if do_sinIPD:
            sin_l.append(jnp.sin(th))
        if do_ILD:
            sp = jnp.sqrt(Yp[:, 0] ** 2 + Yp[:, 1] ** 2)
            sq = jnp.sqrt(Yq[:, 0] ** 2 + Yq[:, 1] ** 2)
            ild_l.append(jnp.log(sp / (sq + 1e-13)))
    out = None
    for lst in (ipd_l, cos_l, sin_l, ild_l):
        if lst:
            cat = jnp.concatenate(lst, 0)
            out = cat if out is None else jnp.concatenate((out, cat), -1)
    return out


if __name__ == "__main__":
    key = jax.random.PRNGKey(0)
    B, T, F, C = 2, 8, 16, 4
    x = jax.random.normal(key, (B, 2, T, F, C), dtype=jnp.float32)
    pair_id = [(0, 1), (0, 2), (2, 3)]
    P = len(pair_id)

    # Phase features (IPD + cosIPD + sinIPD) -> (P*B, 2, T, 3*F)
    ipd_phase = IPD(num_bin=F, do_ILD=False)
    out_phase = ipd_phase(x, pair_id)

    # ILD-only -> (P*B, T, F)
    ipd_ild = IPD(num_bin=F, do_IPD=False, do_cosIPD=False, do_sinIPD=False,
                  do_ILD=True)
    out_ild = ipd_ild(x, pair_id)

    jax.block_until_ready((out_phase, out_ild))
    assert out_phase.shape == (P * B, 2, T, 3 * F), out_phase.shape
    assert out_ild.shape == (P * B, T, F), out_ild.shape

    ref_phase = _reference(x, pair_id, True, True, True, False)
    ref_ild = _reference(x, pair_id, False, False, False, True)
    np.testing.assert_allclose(np.asarray(out_phase), np.asarray(ref_phase),
                               atol=1e-5, rtol=1e-5)
    np.testing.assert_allclose(np.asarray(out_ild), np.asarray(ref_ild),
                               atol=1e-5, rtol=1e-5)
    print("KERNEL_OK")
</pallas_src>

<mosaic_0001>
module attributes {stable_mosaic.version = 11 : i64} {
  func.func @_ipd_kernel(%arg0: i32, %arg1: i32, %arg2: memref<3x2xi32, #tpu.memory_space<smem>>, %arg3: memref<1x2x2x8x16xf32, #tpu.memory_space<vmem>>, %arg4: memref<1x2x2x8x16xf32, #tpu.memory_space<vmem>>, %arg5: memref<1x2x2x8x48xf32, #tpu.memory_space<vmem>>) attributes {dimension_semantics = [#tpu.dimension_semantics<parallel>, #tpu.dimension_semantics<parallel>], iteration_bounds = array<i64: 3, 1>, scalar_prefetch = 1 : i64, scratch_operands = 0 : i64, tpu.core_type = #tpu.core_type<tc>, window_params = [{transform_indices = @transform_0, window_bounds = array<i64: 1, 2, 2, 8, 16>}, {transform_indices = @transform_1, window_bounds = array<i64: 1, 2, 2, 8, 16>}, {transform_indices = @transform_2, window_bounds = array<i64: 1, 2, 2, 8, 48>}]} {
    %c0 = arith.constant 0 : index
    %c0_0 = arith.constant 0 : index
    %c0_1 = arith.constant 0 : index
    %c0_2 = arith.constant 0 : index
    %c0_3 = arith.constant 0 : index
    %0 = vector.load %arg3[%c0, %c0_0, %c0_1, %c0_2, %c0_3] : memref<1x2x2x8x16xf32, #tpu.memory_space<vmem>>, vector<1x2x2x8x16xf32>
    %c0_4 = arith.constant 0 : index
    %c0_5 = arith.constant 0 : index
    %c0_6 = arith.constant 0 : index
    %c0_7 = arith.constant 0 : index
    %c0_8 = arith.constant 0 : index
    %1 = vector.load %arg4[%c0_4, %c0_5, %c0_6, %c0_7, %c0_8] : memref<1x2x2x8x16xf32, #tpu.memory_space<vmem>>, vector<1x2x2x8x16xf32>
    %cst = arith.constant 0.000000e+00 : f32
    %2 = vector.broadcast %cst : f32 to vector<1x2x2x8x16xf32>
    %3 = arith.cmpf olt, %0, %2 : vector<1x2x2x8x16xf32>
    %cst_9 = arith.constant 0.000000e+00 : f32
    %4 = vector.broadcast %cst_9 : f32 to vector<1x2x2x8x16xf32>
    %5 = arith.cmpf olt, %1, %4 : vector<1x2x2x8x16xf32>
    %6 = arith.xori %3, %5 : vector<1x2x2x8x16xi1>
    %cst_10 = arith.constant -3.14159274 : f32
    %cst_11 = arith.constant 0.000000e+00 : f32
    %7 = vector.broadcast %cst_10 : f32 to vector<1x2x2x8x16xf32>
    %8 = vector.broadcast %cst_11 : f32 to vector<1x2x2x8x16xf32>
    %9 = arith.select %6, %7, %8 : vector<1x2x2x8x16xi1>, vector<1x2x2x8x16xf32>
    %cst_12 = arith.constant -1.000000e+00 : f32
    %cst_13 = arith.constant 1.000000e+00 : f32
    %10 = vector.broadcast %cst_12 : f32 to vector<1x2x2x8x16xf32>
    %11 = vector.broadcast %cst_13 : f32 to vector<1x2x2x8x16xf32>
    %12 = arith.select %6, %10, %11 : vector<1x2x2x8x16xi1>, vector<1x2x2x8x16xf32>
    %cst_14 = arith.constant -8.74227765E-8 : f32
    %cst_15 = arith.constant 8.74227765E-8 : f32
    %13 = vector.broadcast %cst_14 : f32 to vector<1x2x2x8x16xf32>
    %14 = vector.broadcast %cst_15 : f32 to vector<1x2x2x8x16xf32>
    %15 = arith.select %3, %13, %14 : vector<1x2x2x8x16xi1>, vector<1x2x2x8x16xf32>
    %cst_16 = arith.constant 0.000000e+00 : f32
    %16 = vector.broadcast %cst_16 : f32 to vector<1x2x2x8x16xf32>
    %17 = arith.select %6, %15, %16 : vector<1x2x2x8x16xi1>, vector<1x2x2x8x16xf32>
    %18 = tpu.concatenate %9, %12, %17 in 4 : vector<1x2x2x8x16xf32>, vector<1x2x2x8x16xf32>, vector<1x2x2x8x16xf32> -> vector<1x2x2x8x48xf32>
    %c0_17 = arith.constant 0 : index
    %c0_18 = arith.constant 0 : index
    %c0_19 = arith.constant 0 : index
    %c0_20 = arith.constant 0 : index
    %c0_21 = arith.constant 0 : index
    %19 = vector.load %arg5[%c0_17, %c0_18, %c0_19, %c0_20, %c0_21] : memref<1x2x2x8x48xf32, #tpu.memory_space<vmem>>, vector<1x2x2x8x48xf32>
    tpu.vector_store %arg5[%c0_17, %c0_18, %c0_19, %c0_20, %c0_21], %18 {strides = array<i32>} : memref<1x2x2x8x48xf32, #tpu.memory_space<vmem>>, vector<1x2x2x8x48xf32>,
    return
  }
  func.func @transform_0(%arg0: i32, %arg1: i32, %arg2: memref<3x2xi32, #tpu.memory_space<smem>>) -> (i32, i32, i32, i32, i32) {
    %0 = arith.index_cast %arg0 : i32 to index
    %c0 = arith.constant 0 : index
    %1 = memref.load %arg2[%0, %c0] : memref<3x2xi32, #tpu.memory_space<smem>>
    %c0_i32 = arith.constant 0 : i32
    %c0_i32_0 = arith.constant 0 : i32
    %c0_i32_1 = arith.constant 0 : i32
    %c0_i32_2 = arith.constant 0 : i32
    return %1, %c0_i32, %c0_i32_0, %arg1, %c0_i32_1 : i32, i32, i32, i32, i32
  }
  func.func @transform_1(%arg0: i32, %arg1: i32, %arg2: memref<3x2xi32, #tpu.memory_space<smem>>) -> (i32, i32, i32, i32, i32) {
    %0 = arith.index_cast %arg0 : i32 to index
    %c1 = arith.constant 1 : index
    %1 = memref.load %arg2[%0, %c1] : memref<3x2xi32, #tpu.memory_space<smem>>
    %c0_i32 = arith.constant 0 : i32
    %c0_i32_0 = arith.constant 0 : i32
    %c0_i32_1 = arith.constant 0 : i32
    %c0_i32_2 = arith.constant 0 : i32
    return %1, %c0_i32, %c0_i32_0, %arg1, %c0_i32_1 : i32, i32, i32, i32, i32
  }
  func.func @transform_2(%arg0: i32, %arg1: i32, %arg2: memref<3x2xi32, #tpu.memory_space<smem>>) -> (i32, i32, i32, i32, i32) {
    %c0_i32 = arith.constant 0 : i32
    %c0_i32_0 = arith.constant 0 : i32
    %c0_i32_1 = arith.constant 0 : i32
    %c0_i32_2 = arith.constant 0 : i32
    return %arg0, %c0_i32, %c0_i32_0, %arg1, %c0_i32_1 : i32, i32, i32, i32, i32
  }
}

</mosaic_0001>

<bundles_post_ra>
// kernel: tpu_custom_call.1
= control target key start
LH: loop header
LB: loop body
LE: loop exit
PB: predicated region body
PF: predicated region fallthrough
CT: control target
= control target key end

     0   :  { %s846_s15 = smov [#allocation3]   ;;  %s1214_s0 = inlined_call_operand.vmem [shape: s32[3,2], index: 0, kind: input, shape index: {}]   ;;  %s1215_s1 = inlined_call_operand.hbm [shape: f32[4,2,2,8,16], index: 1, kind: input, shape index: {}]   ;;  %s1216_s2 = inlined_call_operand.hbm [shape: f32[4,2,2,8,16], index: 2, kind: input, shape index: {}]   ;;  %s1217_s3 = inlined_call_operand.hbm [shape: f32[3,2,2,8,48], index: 3, kind: output, shape index: {}]  }
   0x1   :  { %s9_s14 = sshll.u32 %s1214_s0, 4  ;;  %s10_s14 = int_to_ptr.vmem [resolvable:$true] %s9_s14 }
   0x2   :  { %12 = dma.vmem_to_smem %s10_s14, 64, %s846_s15, [#allocation2] }
   0x3   :  { %784 = dma.done.wait [#allocation2], 64 }
   0x4   :  { %785 = vsyncadd [#allocation2], 4294967232 }
   0x5   :  { %15 = sfence }
   0x6   :  { %16 = vsyncpa [#allocation5], 0 }
   0x7   :  { %18 = vsyncpa [#allocation5 + $0x1], 0 }
   0x8   :  { %19 = vsyncpa [#allocation8], 0 }
   0x9   :  { %21 = vsyncpa [#allocation8 + $0x1], 0 }
   0xa   :  { %22 = vsyncpa [#allocation6], 0 }
   0xb   :  { %24 = vsyncpa [#allocation6 + $0x1], 0  ;;  %s879_s16 = smov 0   ;;  %s881_s17 = smov 0  }
   0xc   :  { %s883_s18 = smov 0   ;;  %s885_s19 = smov 0  }
   0xd   :  { %s887_s0 = smov 0   ;;  %s889_s20 = smov 0  }
   0xe   :  { %s891_s21 = smov 0   ;;  %s893_s22 = smov 0  }
   0xf   :  { %s895_s23 = smov 0   ;;  %s897_s24 = smov 0  }
  0x10   :  { %s899_s25 = smov 0   ;;  %s901_s26 = smov 0  }
  0x11 LB: > { %1228 = sst [smem:[#allocation18_spill]] %s800_s16  ;;  %s465_s27 = sadd.s32 4294967295, %s844_s26   ;;  %s844_s26 = sphi %s901_s26, %s30_s26   ;;  %s840_s25 = sphi %s899_s25, %s1269_s25   ;;  %s836_s24 = sphi %s897_s24, %s1268_s24   ;;  %s832_s23 = sphi %s895_s23, %s1277_s23   ;;  %s828_s22 = sphi %s893_s22, %s1276_s22   ;;  %s824_s21 = sphi %s891_s21, %s1275_s21   ;;  %s820_s20 = sphi %s889_s20, %s1274_s20   ;;  %s816_s0 = sphi %s887_s0, %s1273_s0   ;;  %s812_s19 = sphi %s885_s19, %s1272_s19   ;;  %s808_s18 = sphi %s883_s18, %s1265_s18   ;;  %s804_s17 = sphi %s881_s17, %s1271_s17   ;;  %s800_s16 = sphi %s879_s16, %s1270_s16  }
  0x12   : > { %1229 = sst [smem:[#allocation19_spill]] %s808_s18  ;;  %s466_s28 = sadd.s32 4294967294, %s844_s26  }
  0x13   : > { %1230 = sst [smem:[#allocation20_spill]] %s832_s23  ;;  %s42_s29 = sadd.s32 1, %s840_s25 }
  0x14   : > { %1231 = sst [smem:[#allocation21_spill]] %s840_s25  ;;  %p44_p0 = scmp.ge.s32.totalorder %s42_s29, 3 }
  0x15   : > { %s941_s30 = sshll.u32 %s840_s25, 7  ;;  %p62_p1 = scmp.ne.s32.totalorder %s832_s23, %s828_s22 }
  0x16   : > { %s47_s4 = sld [smem:[#allocation3 + %s941_s30]]  ;;  %s1279_s29 = smov (%p44_p0, %s42_s29), 0 }
  0x17   : > { %1232 = sst [smem:[#allocation22_spill]] %s1279_s29  ;;  %p1226_p2 = scmp.eq.s32.totalorder %s844_s26, 0 }
  0x18   : > { %p68_p3 = scmp.ne.s32.totalorder %s828_s22, %s824_s21  ;;  %s468_s5 = sshll.u32 %s1279_s29, 7 }
  0x19   : > { %p951_p4 = scmp.eq.s32.totalorder %s465_s27, 0  ;;  %s49_s7 = sld [smem:[#allocation3 + %s468_s5]] }
  0x1a   : > { %s55_s8 = sadd.s32 1, %s832_s23  ;;  %p958_p5 = por %p1226_p2, %p62_p1 }
  0x1b   : > { %p964_p6 = por %p951_p4, %p68_p3  ;;  %s82_s11 = sadd.s32 1, %s468_s5 }
  0x1c   : > { %s112_s12 = ssub.s32 %s840_s25, %s1279_s29  ;;  %s117_s13 = sadd.s32 1, %s808_s18 }
  0x1d   : > { %p115_p7 = scmp.eq.s32.totalorder %s112_s12, 0  ;;  %p127_p8 = scmp.ne.s32.totalorder %s808_s18, %s804_s17 }
  0x1e   : > { %p128_p9 = scmp.eq.s32.totalorder %s465_s27, 2  ;;  %p133_p12 = scmp.ne.s32.totalorder %s804_s17, %s800_s16 }
  0x1f   : > { %s974_s14 = scalar_select %p115_p7, %s808_s18, %s117_s13  }
  0x20   : > { %s50_s15 = ssub.s32 %s47_s4, %s49_s7  ;;  %p976_p10 = por %p128_p9, %p127_p8 }
  0x21   : > { %1236 = sst [smem:[#allocation23_spill]] %s974_s14  ;;  %p53_p11 = scmp.eq.s32.totalorder %s50_s15, 0 }
  0x22   : > { %p134_p13 = scmp.eq.s32.totalorder %s466_s28, 2  ;;  %s985_s12 = sld [smem:[#allocation3 + %s82_s11]] }
  0x23   : > { %s983_s5 = scalar_select %p53_p11, %s832_s23, %s55_s8  }
  0x24   : > { %p987_p0 = por %p134_p13, %p133_p12  ;;  %p1225_p1 = scmp.lt.s32.totalorder %s844_s26, 3 }
  0x25   : > { %1238 = sst [smem:[#allocation24_spill]] %s983_s5  ;;  %s154_s4 = sand.u32 1, %s832_s23  }
  0x26   : > { %s1239_s27 = scalar_select %p987_p0, 1, 0 }
  0x27   : > { %s473_s7 = sshll.u32 %s154_s4, 5  ;;  %p997_p3 = pnand %p1225_p1, %p958_p5 }
  0x28   : > { %1240 = sst [smem:[#allocation25_spill]] %s1239_s27  ;;  %s158_s11 = scalar_lea.vmem [#allocation4], %s473_s7 }
  0x29   : > { %s493_s28 = scalar_select %p958_p5, [#allocation3], [#allocation10] }
  0x2a   : > { %s494_s8 = scalar_select %p958_p5, %s941_s30, 0 }
  0x2b   : > { %s1281_s28 = smov (!%p1225_p1, %s493_s28), [#allocation12]  ;;  %s1010_s15 = sshll.u32 %s158_s11, 4 }
  0x2c   : > { %s1283_s8 = smov (!%p1225_p1, %s494_s8), 0  ;;  %1242 = sst [smem:[#allocation26_spill]] %s1010_s15 }
  0x2d   : > { %s160_s29 = sld [smem:[%s1281_s28 + %s1283_s8]]  ;;  %p481_p7 = scmp.ge.s32.totalorder %s844_s26, 1 }
  0x2e   : > { %p203_p8 = scmp.lt.s32.totalorder %s844_s26, 4  ;;  %s79_s5 = sadd.s32 1, %s941_s30 }
  0x2f   : > { %s80_s7 = sld [smem:[#allocation3 + %s79_s5]]  ;;  %s155_s28 = scalar_lea.sflag [#allocation5], %s154_s4 }
  0x30   : > { %p1015_p9 = pnand %p481_p7, %p203_p8  ;;  %p652_p12 = pneg %p997_p3 }
  0x31   : > { %s655_s16 = scalar_lea.hbm %s1215_s1, 128 }
  0x33   : > { %s490_s9 = sshll.u32 %s160_s29, 5 }
  0x34   : > { %s166_s18 = scalar_lea.hbm %s1215_s1, %s490_s9 }
  0x35   : > { %s167_s11 = sshll.u32 %s166_s18, 4  ;;  %s168_s11 = int_to_ptr.hbm [resolvable:$true] %s167_s11 }
  0x36   : > { %s648_s8 = sshra.s32 %s168_s11, 4  ;;  %s649_s8 = int_to_ptr.hbm [resolvable:$true] %s648_s8 }
  0x37   : > { %s650_s15 = scalar_lea.hbm %s649_s8, 32  ;;  %p656_p8 = scmp.lt.s32.totalorder %s649_s8, %s1215_s1 }
  0x38   : > { %p651_p11 = scmp.ne.s32.totalorder %s649_s8, %s650_s15  ;;  %p657_p1 = scmp.lt.s32.totalorder %s655_s16, %s650_s15 }
  0x3a   : > { %p653_p13 = pnand %p652_p12, %p651_p11  ;;  %p658_p2 = por %p657_p1, %p656_p8 }
  0x3c   : > { %p654_p7 = pneg %p653_p13 }
  0x3e   : > { %p659_p5 = pnand %p658_p2, %p654_p7 }
  0x40   : > { %662 = shalt.err (!%p659_p5)
}
  0x41   : > { %s1227_s18 = smov 128   ;;  %s1244_s4 = sld [smem:[#allocation26_spill]] }
  0x42   : > { %s848_s16 = smov 8   ;;  %p102_p2 = scmp.ne.s32.totalorder %s816_s0, %s812_s19 }
  0x43   : > { %s89_s15 = sadd.s32 1, %s820_s20  ;;  %p1246_p1 = scmp.eq.s32.totalorder %s844_s26, 0 }
  0x44   : > { %p1247_p5 = scmp.ne.s32.totalorder %s820_s20, %s816_s0  ;;  %s84_s9 = ssub.s32 %s80_s7, %s985_s12 }
  0x45   : > { %p1053_p12 = por %p102_p2, %p951_p4  ;;  %p87_p13 = scmp.eq.s32.totalorder %s84_s9, 0 }
  0x46   : > { %p98_p11 = por %p1247_p5, %p1246_p1  ;;  %s179_s29 = sand.u32 1, %s820_s20  }
  0x47   : > { %s1245_s27 = int_to_ptr.vmem [resolvable:$true] %s1244_s4  ;;  %p1249_p7 = scmp.lt.s32.totalorder %s844_s26, 3 }
  0x48   : > { %508 = dma.hbm_to_vmem [thread:$0]  (!%p997_p3), %s168_s11, 512, %s1245_s27, %s155_s28, %s1227_s18, %s1227_s18, %s848_s16  }
  0x49   : > { %p1060_p8 = pnand %p1249_p7, %p98_p11  ;;  %s477_s19 = sshll.u32 %s179_s29, 5 }
  0x4a   : > { %s1065_s23 = scalar_select %p87_p13, %s820_s20, %s89_s15  }
  0x4b   : > { %s496_s11 = scalar_select %p98_p11, [#allocation3], [#allocation11] }
  0x4c   : > { %s1285_s5 = smov (!%p98_p11, %s79_s5), 0  ;;  %p1251_p3 = pmov %p1249_p7 }
  0x4d   : > { %s183_s12 = scalar_lea.vmem [#allocation7], %s477_s19  ;;  %s180_s9 = scalar_lea.sflag [#allocation8], %s179_s29 }
  0x4e   : > { %s1287_s11 = smov (!%p1251_p3, %s496_s11), [#allocation13]  ;;  %p1252_p4 = pmov %p1251_p3 }
  0x4f   : > { %s195_s7 = sshll.u32 %s183_s12, 4  ;;  %p682_p1 = pneg %p1060_p8  ;;  %s196_s7 = int_to_ptr.vmem [resolvable:$true] %s195_s7 }
  0x50   : > { %s1289_s5 = smov (!%p1252_p4, %s1285_s5), 0 }
  0x51   : > { %s186_s6 = sld [smem:[%s1287_s11 + %s1289_s5]]  ;;  %s685_s11 = scalar_lea.hbm %s1216_s2, 128 }
  0x57   : > { %s491_s28 = sshll.u32 %s186_s6, 5 }
  0x58   : > { %s192_s27 = scalar_lea.hbm %s1216_s2, %s491_s28 }
  0x59   : > { %s193_s15 = sshll.u32 %s192_s27, 4  ;;  %s194_s15 = int_to_ptr.hbm [resolvable:$true] %s193_s15 }
  0x5a   : > { %s678_s18 = sshra.s32 %s194_s15, 4  ;;  %s679_s18 = int_to_ptr.hbm [resolvable:$true] %s678_s18 }
  0x5b   : > { %s680_s30 = scalar_lea.hbm %s679_s18, 32  ;;  %p686_p13 = scmp.lt.s32.totalorder %s679_s18, %s1216_s2 }
  0x5c   : > { %p681_p2 = scmp.ne.s32.totalorder %s679_s18, %s680_s30  ;;  %p687_p7 = scmp.lt.s32.totalorder %s685_s11, %s680_s30 }
  0x5e   : > { %p683_p5 = pnand %p682_p1, %p681_p2  ;;  %p688_p3 = por %p687_p7, %p686_p13 }
  0x60   : > { %p684_p11 = pneg %p683_p5 }
  0x62   : > { %p689_p4 = pnand %p688_p3, %p684_p11 }
  0x64   : > { %692 = shalt.err (!%p689_p4)
}
  0x65   : > { %s1253_s29 = smov 128   ;;  %207 = sbr.rel (%p1015_p9) target bundleno = 251 (0xfb), region = 28 }
  0x66   : > { %513 = dma.hbm_to_vmem [thread:$0]  (!%p1060_p8), %s194_s15, 512, %s196_s7, %s180_s9, %s1253_s29, %s1253_s29, %s848_s16  }
  0x67   : > { %s209_s28 = sand.u32 (!%p1015_p9), 1, %s828_s22  }
  0x68   : > { %s482_s14 = sshll.u32 (!%p1015_p9), %s209_s28, 5  ;;  %s210_s4 = scalar_lea.sflag (!%p1015_p9), [#allocation5], %s209_s28 }
  0x69   : > { %s213_s27 = scalar_lea.vmem (!%p1015_p9), [#allocation4], %s482_s14 }
  0x6a   : > { %787 = dma.done.wait (%p964_p6), %s210_s4, 512  }
  0x6b   : > { %789 = vsyncadd (%p964_p6), %s210_s4, 4294966784  ;;  %s219_s18 = sand.u32 1, %s816_s0  }
  0x6c   : > { %s483_s13 = sshll.u32 %s219_s18, 5  ;;  %s220_s30 = scalar_lea.sflag [#allocation8], %s219_s18 }
  0x6d   : > { %s223_s16 = scalar_lea.vmem [#allocation7], %s483_s13 }
  0x6e   : > { %791 = dma.done.wait (%p1053_p12), %s220_s30, 512  }
  0x6f   : > { %793 = vsyncadd (%p1053_p12), %s220_s30, 4294966784  ;;  %v255_v0 = vld [vmem:[%s213_s27] sm:$0xff]  ;;  %v256_v2 = vld [vmem:[%s213_s27 + $0x8] sm:$0xff]  ;;  %v849_v7 = vmov 8.742278e-08   ;;  %v850_v12 = vmov 1.0  }
  0x70   : > { %v259_v1 = vld [vmem:[%s223_s16] sm:$0xff]  ;;  %vm263_vm0 = vcmp.lt.f32.partialorder %v255_v0, 0.0  ;;  %v260_v3 = vld [vmem:[%s223_s16 + $0x8] sm:$0xff]  ;;  %vm264_vm2 = vcmp.lt.f32.partialorder %v256_v2, 0.0  ;;  %v257_v4 = vld [vmem:[%s213_s27 + $0x10] sm:$0xff]  ;;  %s851_s25 = smov 32  }
  0x71   : > { %vm267_vm1 = vcmp.lt.f32.partialorder %v259_v1, 0.0  ;;  %v258_v5 = vld [vmem:[%s213_s27 + $0x18] sm:$0xff]  ;;  %v283_v8 = vsel %vm263_vm0, -8.742278e-08, %v849_v7  ;;  %vm268_vm4 = vcmp.lt.f32.partialorder %v260_v3, 0.0  ;;  %v261_v9 = vld [vmem:[%s223_s16 + $0x10] sm:$0xff] }
  0x72   : > { %vm1101_vm3 = vmxor %vm263_vm0, %vm267_vm1  ;;  %v262_v14 = vld [vmem:[%s223_s16 + $0x18] sm:$0xff]  ;;  %vm265_vm6 = vcmp.lt.f32.partialorder %v257_v4, 0.0  ;;  %vm266_vm7 = vcmp.lt.f32.partialorder %v258_v5, 0.0  ;;  %vm269_vm8 = vcmp.lt.f32.partialorder %v261_v9, 0.0  ;;  %v284_v19 = vsel %vm264_vm2, -8.742278e-08, %v849_v7 }
  0x73   : > { %v287_v10 = vsel %vm1101_vm3, %v283_v8, 0.0  ;;  %vm1108_vm5 = vmxor %vm264_vm2, %vm268_vm4  ;;  %v279_v13 = vsel %vm1101_vm3, -1.0, %v850_v12  ;;  %vm270_vm9 = vcmp.lt.f32.partialorder %v262_v14, 0.0  ;;  %v285_v18 = vsel %vm265_vm6, -8.742278e-08, %v849_v7  ;;  %s852_s10 = smov 16  }
  0x74   : > { %311 = vrot.lane.b32.xlu1 %v287_v10, %s851_s25  ;;  %v280_v15 = vsel %vm1108_vm5, -1.0, %v850_v12  ;;  %vm1116_vm10 = vmxor %vm265_vm6, %vm269_vm8  ;;  %v288_v24 = vsel %vm1108_vm5, %v284_v19, 0.0  ;;  %v286_v25 = vsel %vm266_vm7, -8.742278e-08, %v849_v7  ;;  %s247_s8 = sand.u32 1, %s804_s17   ;;  %v853_v30 = vmov 0.0  }
  0x75   : > { %v626_v16 = vpack.i.bf16 %v280_v15, %v279_v13  ;;  %vm1121_vm11 = vmxor %vm266_vm7, %vm270_vm9  ;;  %v289_v21 = vsel %vm1116_vm10, %v285_v18, 0.0  ;;  %v281_v22 = vsel %vm1116_vm10, -1.0, %v850_v12  ;;  %s484_s7 = sshll.u32 %s247_s8, 5  ;;  %v275_v31 = vsel %vm1101_vm3, -3.1415927, %v853_v30  ;;  %s492_s15 = sshll.u32 %s836_s24, 5 }
  0x76   : > { %315 = vrot.lane.b32.xlu2 %v289_v21, %s851_s25  ;;  %v282_v23 = vsel %vm1121_vm11, -1.0, %v850_v12  ;;  %v290_v27 = vsel %vm1121_vm11, %v286_v25, 0.0  ;;  %vm323_vm12 = vcmask 130048   ;;  %vm328_vm13 = vcmask 261120   ;;  %s249_s9 = scalar_lea.vmem [#allocation9], %s484_s7  ;;  %s351_s11 = scalar_lea.hbm %s1217_s3, %s492_s15 }
  0x77   : > { %627 = vrot.lane.b32.xlu0 %v626_v16, %s852_s10  ;;  %v631_v26 = vpack.i.bf16 %v282_v23, %v281_v22  ;;  %v276_v35 = vsel %vm1108_vm5, -3.1415927, %v853_v30  ;;  %vm333_vm14 = vcmask 392192   ;;  %s352_s6 = sshll.u32 %s249_s9, 4  ;;  %v277_v41 = vsel %vm1116_vm10, -3.1415927, %v853_v30  ;;  %s353_s6 = int_to_ptr.vmem [resolvable:$true] %s352_s6 }
  0x78   : > { %v278_v43 = vsel %vm1121_vm11, -3.1415927, %v853_v30  ;;  %s354_s24 = sshll.u32 %s351_s11, 4  ;;  %s339_s12 = scalar_lea.sflag [#allocation6], %s247_s8  ;;  %s355_s24 = int_to_ptr.hbm [resolvable:$true] %s354_s24 }
  0x79   : > { %s722_s29 = sshra.s32 %s355_s24, 4  ;;  %s728_s27 = scalar_lea.hbm %s1217_s3, 96  ;;  %s723_s29 = int_to_ptr.hbm [resolvable:$true] %s722_s29 }
  0x7a   : > { %s724_s28 = scalar_lea.hbm %s723_s29, 32  ;;  %p729_p8 = scmp.lt.s32.totalorder %s723_s29, %s1217_s3 }
  0x7b   : > { %p725_p6 = scmp.ne.s32.totalorder %s723_s29, %s724_s28  ;;  %p730_p2 = scmp.lt.s32.totalorder %s728_s27, %s724_s28 }
  0x7c   : > { %313 = vrot.lane.b32.xlu1 %v288_v24, %s851_s25 }
  0x7d   : > { %p726_p9 = pnand %p725_p6, %p976_p10  ;;  %p731_p1 = por %p730_p2, %p729_p8 }
  0x7e   : > { %317 = vrot.lane.b32.xlu2 %v290_v27, %s851_s25 }
  0x7f   : > { %632 = vrot.lane.b32.xlu0 %v631_v26, %s852_s10  ;;  %p727_p12 = pneg %p726_p9 }
  0x81   : > { %p732_p5 = pnand %p731_p1, %p727_p12 }
  0xd0   : > { %v316_v29 = vpop.permute.xlu2 %315 }
  0xd8   : > { %v318_v46 = vpop.permute.xlu2 %317 }
  0xe6   : > { %v312_v28 = vpop.permute.xlu1 %311 }
  0xe9   : > { %v628_v32 = vpop.permute.xlu0 %627 }
  0xea   : > { %v630_v33 = vunpack.i.h.bf16 %v628_v32  ;;  %v629_v34 = vunpack.i.l.bf16 %v628_v32 }
  0xec   : > { %v324_v36 = vsel %vm323_vm12, %v275_v31, %v629_v34  ;;  %v325_v39 = vsel %vm323_vm12, %v276_v35, %v630_v33 }
  0xed   : > { %v329_v37 = vsel %vm328_vm13, %v324_v36, %v312_v28 }
  0xee   : > { %v314_v38 = vpop.permute.xlu1 %313  ;;  %334 = vst.msk [vmem:[%s249_s9] sm:$0xff] %vm333_vm14, %v329_v37 }
  0xef   : > { %v330_v40 = vsel %vm328_vm13, %v325_v39, %v314_v38 }
  0xf0   : > { %335 = vst.msk [vmem:[%s249_s9 + $0x8] sm:$0xff] %vm333_vm14, %v330_v40 }
  0xf1   : > { %v633_v42 = vpop.permute.xlu0 %632 }
  0xf2   : > { %v635_v44 = vunpack.i.h.bf16 %v633_v42  ;;  %v634_v45 = vunpack.i.l.bf16 %v633_v42 }
  0xf4   : > { %v326_v47 = vsel %vm323_vm12, %v277_v41, %v634_v45  ;;  %v327_v48 = vsel %vm323_vm12, %v278_v43, %v635_v44 }
  0xf5   : > { %v331_v49 = vsel %vm328_vm13, %v326_v47, %v316_v29  ;;  %v332_v50 = vsel %vm328_vm13, %v327_v48, %v318_v46 }
  0xf6   : > { %336 = vst.msk [vmem:[%s249_s9 + $0x10] sm:$0xff] %vm333_vm14, %v331_v49 }
  0xf7   : > { %337 = vst.msk [vmem:[%s249_s9 + $0x18] sm:$0xff] %vm333_vm14, %v332_v50 }
  0xf8   : > { %735 = shalt.err (!%p732_p5)
}
  0xf9   : > { %s854_s30 = smov 128   ;;  %s855_s16 = smov 8  }
  0xfa   : > { %501 = dma.vmem_to_hbm [thread:$0]  (%p976_p10), %s353_s6, 512, %s355_s24, %s339_s12, %s854_s30, %s854_s30, %s855_s16  }
  0xfb PF: > { %s1262_s25 = sld [smem:[#allocation18_spill]]  ;;  %p519_p11 = scmp.ge.s32.totalorder %s844_s26, 2 }
  0xfd   : > { %p515_p13 = pnand %p519_p11, %p987_p0 }
  0xff   : > { %p516_p7 = pneg %p515_p13 }
 0x101   : > { %s369_s8 = sand.u32 1, %s1262_s25  }
 0x102   : > { %s370_s7 = scalar_lea.sflag [#allocation6], %s369_s8 }
 0x103   : > { %795 = dma.done.wait (%p516_p7), %s370_s7, 512  }
 0x104   : > { %797 = vsyncadd (%p516_p7), %s370_s7, 4294966784  ;;  %s30_s26 = sadd.s32 1, %s844_s26   ;;  %s1264_s15 = sld [smem:[#allocation19_spill]] }
 0x105   : > { %p27_p3 = scmp.ge.s32.totalorder %s30_s26, 5   ;;  %s1265_s18 = sld [smem:[#allocation23_spill]] }
 0x106   : > { %s1266_s9 = sld [smem:[#allocation20_spill]]  ;;  %s1270_s16 = smov %s804_s17 }
 0x107   : > { %s1267_s5 = sld [smem:[#allocation24_spill]]  ;;  %s1272_s19 = smov %s816_s0 }
 0x108   : > { %s1268_s24 = sld [smem:[#allocation21_spill]]  ;;  %s1273_s0 = smov %s820_s20 }
 0x109   : > { %s1269_s25 = sld [smem:[#allocation22_spill]]  ;;  %s1274_s20 = smov %s1065_s23 }
 0x10a   : > { %s1271_s17 = smov %s1264_s15  ;;  %s1275_s21 = smov %s828_s22 }
 0x10b   :  { %29 = sbr.rel (!%p27_p3) target bundleno = 17 (0x11), region = 86 }
 0x10c   : > { %s1276_s22 = smov %s1266_s9 }
 0x10d   : > { %s1277_s23 = smov %s1267_s5 }
 0x110   :  { %376 = vsyncpa [#allocation5], 1 }
 0x111   :  { %378 = vsyncpa [#allocation5 + $0x1], 1 }
 0x112   :  { %379 = vsyncpa [#allocation8], 1 }
 0x113   :  { %381 = vsyncpa [#allocation8 + $0x1], 1 }
 0x114   :  { %382 = vsyncpa [#allocation6], 1 }
 0x115   :  { %384 = vsyncpa [#allocation6 + $0x1], 1 }

</bundles_post_ra>
